<compile_context>
chip_gen: v7x
topology: tpu7x:2x2x1
jax: 0.10.0
libtpu: 0.0.40
codegen_flags: <defaults>
</compile_context>

<pallas_src>
import jax
import jax.numpy as jnp
from jax.experimental import pallas as pl
from jax.experimental.pallas import tpu as pltpu

D_IN, D_H1, D_H2, D_OUT = 784, 128, 64, 10
D_OUT_PAD = 128          # lane-dense output slab (multiple of 128)
NEG_BIG = -1e30          # pad-lane bias -> exp() contributes 0 to the softmax sum


def mlp_kernel(x_ref, w1_ref, b1_ref, w2_ref, b2_ref, w3_ref, b3_ref, o_ref):
    # x arrives f32 (no wrapper-side cast pass); cast to bf16 only for the MXU.
    x = x_ref[...].astype(jnp.bfloat16)
    # fc1: bf16 x bf16 on the MXU, f32 accumulation; bias + relu in f32
    h1 = jnp.dot(x, w1_ref[...].astype(jnp.bfloat16),
                 preferred_element_type=jnp.float32)
    h1 = jnp.maximum(h1 + b1_ref[...], 0.0)
    # fc2
    h2 = jnp.dot(h1.astype(jnp.bfloat16), w2_ref[...].astype(jnp.bfloat16),
                 preferred_element_type=jnp.float32)
    h2 = jnp.maximum(h2 + b2_ref[...], 0.0)
    # fc3 (output padded to 128 lanes; padded columns get bias = -1e30)
    logits = jnp.dot(h2.astype(jnp.bfloat16), w3_ref[...].astype(jnp.bfloat16),
                     preferred_element_type=jnp.float32) + b3_ref[...]
    # log_softmax along the last axis (padded lanes: exp(-huge) == 0, no effect)
    m = jnp.max(logits, axis=-1, keepdims=True)
    shifted = logits - m
    lse = jnp.log(jnp.sum(jnp.exp(shifted), axis=-1, keepdims=True))
    o_ref[...] = (shifted - lse).astype(o_ref.dtype)


def _round_up(n, m):
    return ((n + m - 1) // m) * m


def mlp_forward(x, params, *, batch_tile=2048):
    """x: any shape with 784 elements per row (PyTorch-style view(-1, 784))."""
    w1, b1, w2, b2, w3, b3 = params
    x = x.reshape(-1, D_IN).astype(jnp.float32)
    B = x.shape[0]

    # Effective batch tile: at most `batch_tile`, at least the (sublane-rounded)
    # batch.  No explicit batch padding: Pallas masks the OOB tail of the last block.
    bt = min(_round_up(batch_tile, 16), _round_up(max(B, 1), 8))
    # v7x: keep >=2 grid steps for a moderate batch so the "parallel" axis can be
    # sharded across both TensorCores.
    if B >= 128 and pl.cdiv(B, bt) < 2:
        bt = _round_up(pl.cdiv(B, 2), 16)
    grid = (pl.cdiv(B, bt),)
    full = lambda i: (0, 0)

    # Weights stay f32 (tiny; fetched once — their block index never changes).
    w3_p = (jnp.zeros((D_H2, D_OUT_PAD), jnp.float32)
            .at[:, :D_OUT].set(w3.astype(jnp.float32)))
    b3_p = (jnp.full((1, D_OUT_PAD), NEG_BIG, jnp.float32)
            .at[:, :D_OUT].set(b3.astype(jnp.float32).reshape(1, D_OUT)))
    b1_f = b1.astype(jnp.float32).reshape(1, D_H1)
    b2_f = b2.astype(jnp.float32).reshape(1, D_H2)
    w1_f = w1.astype(jnp.float32)
    w2_f = w2.astype(jnp.float32)

    w_bytes = ((D_IN * D_H1 + D_H1 * D_H2 + D_H2 * D_OUT_PAD) * 4
               + (D_H1 + D_H2 + D_OUT_PAD) * 4)
    # Double-buffered VMEM footprint (+ headroom); capped below v7x's 64 MiB physical.
    block_bytes = bt * D_IN * 4 + bt * D_OUT_PAD * 2 + w_bytes
    vmem_limit = int(min(56 * 1024 * 1024,
                         max(32 * 1024 * 1024, 2 * block_bytes + (4 << 20))))

    flops = 2 * B * (D_IN * D_H1 + D_H1 * D_H2 + D_H2 * D_OUT_PAD)
    bytes_accessed = (B * D_IN * 4          # x (f32, dominant stream)
                      + B * D_OUT_PAD * 2   # output (bf16)
                      + w_bytes)

    out = pl.pallas_call(
        mlp_kernel,
        out_shape=jax.ShapeDtypeStruct((B, D_OUT_PAD), jnp.bfloat16),
        grid_spec=pltpu.PrefetchScalarGridSpec(
            num_scalar_prefetch=0,
            grid=grid,
            in_specs=[
                pl.BlockSpec((bt, D_IN), lambda i: (i, 0)),
                pl.BlockSpec((D_IN, D_H1), full),
                pl.BlockSpec((1, D_H1), full),
                pl.BlockSpec((D_H1, D_H2), full),
                pl.BlockSpec((1, D_H2), full),
                pl.BlockSpec((D_H2, D_OUT_PAD), full),
                pl.BlockSpec((1, D_OUT_PAD), full),
            ],
            out_specs=pl.BlockSpec((bt, D_OUT_PAD), lambda i: (i, 0)),
        ),
        compiler_params=pltpu.CompilerParams(
            dimension_semantics=("parallel",),
            vmem_limit_bytes=vmem_limit,
        ),
        cost_estimate=pl.CostEstimate(
            flops=flops,
            transcendentals=B * D_OUT_PAD,
            bytes_accessed=bytes_accessed,
        ),
    )(x, w1_f, b1_f, w2_f, b2_f, w3_p, b3_p)

    # Slice off pad lanes; return f32 log-probs (PyTorch semantics).
    return out[:, :D_OUT].astype(jnp.float32)


def init_params(key):
    """Deterministic init matching nn.Linear shapes (weights transposed to (in, out))."""
    ks = jax.random.split(key, 6)

    def linear(kw, kb, fan_in, fan_out):
        bound = 1.0 / jnp.sqrt(fan_in)
        w = jax.random.uniform(kw, (fan_in, fan_out), jnp.float32, -bound, bound)
        b = jax.random.uniform(kb, (1, fan_out), jnp.float32, -bound, bound)
        return w, b

    w1, b1 = linear(ks[0], ks[1], D_IN, D_H1)
    w2, b2 = linear(ks[2], ks[3], D_H1, D_H2)
    w3, b3 = linear(ks[4], ks[5], D_H2, D_OUT)
    return (w1, b1, w2, b2, w3, b3)


def reference_forward(x, params):
    x = x.reshape(-1, D_IN).astype(jnp.float32)
    w1, b1, w2, b2, w3, b3 = params
    h1 = jax.nn.relu(x @ w1 + b1)
    h2 = jax.nn.relu(h1 @ w2 + b2)
    logits = h2 @ w3 + b3
    return jax.nn.log_softmax(logits, axis=1)


if __name__ == "__main__":
    key = jax.random.PRNGKey(0)
    k_param, k_x = jax.random.split(key)
    params = init_params(k_param)
    # MNIST-like input (B, 1, 28, 28); the forward flattens it to (B, 784).
    x = jax.random.normal(k_x, (8, 1, 28, 28), jnp.float32)

    out = mlp_forward(x, params)
    out = jax.block_until_ready(out)

    ref = reference_forward(x, params)  # full-f32 reference (PyTorch semantics)
    assert out.shape == (8, D_OUT)
    # bf16 MXU inputs / bf16 writeback with f32 accumulation -> loosened tolerance.
    assert jnp.allclose(out, ref, atol=3e-2, rtol=3e-2), (
        float(jnp.max(jnp.abs(out - ref))))
    print("KERNEL_OK")
</pallas_src>

<mosaic_0001>
module attributes {stable_mosaic.version = 11 : i64} {
  func.func @mlp_kernel(%arg0: i32, %arg1: memref<8x784xf32, #tpu.memory_space<vmem>>, %arg2: memref<784x128xf32, #tpu.memory_space<vmem>>, %arg3: memref<1x128xf32, #tpu.memory_space<vmem>>, %arg4: memref<128x64xf32, #tpu.memory_space<vmem>>, %arg5: memref<1x64xf32, #tpu.memory_space<vmem>>, %arg6: memref<64x128xf32, #tpu.memory_space<vmem>>, %arg7: memref<1x128xf32, #tpu.memory_space<vmem>>, %arg8: memref<8x128xbf16, #tpu.memory_space<vmem>>) attributes {dimension_semantics = [#tpu.dimension_semantics<parallel>], iteration_bounds = array<i64: 1>, scalar_prefetch = 0 : i64, scratch_operands = 0 : i64, tpu.core_type = #tpu.core_type<tc>, window_params = [{transform_indices = @transform_0, window_bounds = array<i64: 8, 784>}, {pipeline_mode = #tpu.pipeline_mode<synchronous>, transform_indices = @transform_1, window_bounds = array<i64: 784, 128>}, {pipeline_mode = #tpu.pipeline_mode<synchronous>, transform_indices = @transform_2, window_bounds = array<i64: 1, 128>}, {pipeline_mode = #tpu.pipeline_mode<synchronous>, transform_indices = @transform_3, window_bounds = array<i64: 128, 64>}, {pipeline_mode = #tpu.pipeline_mode<synchronous>, transform_indices = @transform_4, window_bounds = array<i64: 1, 64>}, {pipeline_mode = #tpu.pipeline_mode<synchronous>, transform_indices = @transform_5, window_bounds = array<i64: 64, 128>}, {pipeline_mode = #tpu.pipeline_mode<synchronous>, transform_indices = @transform_6, window_bounds = array<i64: 1, 128>}, {transform_indices = @transform_7, window_bounds = array<i64: 8, 128>}]} {
    %c0 = arith.constant 0 : index
    %c0_0 = arith.constant 0 : index
    %0 = vector.load %arg1[%c0, %c0_0] : memref<8x784xf32, #tpu.memory_space<vmem>>, vector<8x784xf32>
    %1 = arith.truncf %0 : vector<8x784xf32> to vector<8x784xbf16>
    %c0_1 = arith.constant 0 : index
    %c0_2 = arith.constant 0 : index
    %2 = vector.load %arg2[%c0_1, %c0_2] : memref<784x128xf32, #tpu.memory_space<vmem>>, vector<784x128xf32>
    %3 = arith.truncf %2 : vector<784x128xf32> to vector<784x128xbf16>
    %cst = arith.constant dense<0.000000e+00> : vector<8x128xf32>
    %4 = tpu.matmul %1, %3, %cst {dimension_numbers = #tpu.dot_dimension_numbers<[1], [0], [0], [1], [0, 0, 1, 1], [], []>} : vector<8x784xbf16>, vector<784x128xbf16>, vector<8x128xf32> -> vector<8x128xf32>
    %c0_3 = arith.constant 0 : index
    %c0_4 = arith.constant 0 : index
    %5 = vector.load %arg3[%c0_3, %c0_4] : memref<1x128xf32, #tpu.memory_space<vmem>>, vector<1x128xf32>
    %6 = vector.broadcast %5 : vector<1x128xf32> to vector<8x128xf32>
    %7 = arith.addf %4, %6 : vector<8x128xf32>
    %cst_5 = arith.constant 0.000000e+00 : f32
    %8 = vector.broadcast %cst_5 : f32 to vector<8x128xf32>
    %9 = arith.maximumf %7, %8 : vector<8x128xf32>
    %10 = arith.truncf %9 : vector<8x128xf32> to vector<8x128xbf16>
    %c0_6 = arith.constant 0 : index
    %c0_7 = arith.constant 0 : index
    %11 = vector.load %arg4[%c0_6, %c0_7] : memref<128x64xf32, #tpu.memory_space<vmem>>, vector<128x64xf32>
    %12 = arith.truncf %11 : vector<128x64xf32> to vector<128x64xbf16>
    %cst_8 = arith.constant dense<0.000000e+00> : vector<8x64xf32>
    %13 = tpu.matmul %10, %12, %cst_8 {dimension_numbers = #tpu.dot_dimension_numbers<[1], [0], [0], [1], [0, 0, 1, 1], [], []>} : vector<8x128xbf16>, vector<128x64xbf16>, vector<8x64xf32> -> vector<8x64xf32>
    %c0_9 = arith.constant 0 : index
    %c0_10 = arith.constant 0 : index
    %14 = vector.load %arg5[%c0_9, %c0_10] : memref<1x64xf32, #tpu.memory_space<vmem>>, vector<1x64xf32>
    %15 = vector.broadcast %14 : vector<1x64xf32> to vector<8x64xf32>
    %16 = arith.addf %13, %15 : vector<8x64xf32>
    %cst_11 = arith.constant 0.000000e+00 : f32
    %17 = vector.broadcast %cst_11 : f32 to vector<8x64xf32>
    %18 = arith.maximumf %16, %17 : vector<8x64xf32>
    %19 = arith.truncf %18 : vector<8x64xf32> to vector<8x64xbf16>
    %c0_12 = arith.constant 0 : index
    %c0_13 = arith.constant 0 : index
    %20 = vector.load %arg6[%c0_12, %c0_13] : memref<64x128xf32, #tpu.memory_space<vmem>>, vector<64x128xf32>
    %21 = arith.truncf %20 : vector<64x128xf32> to vector<64x128xbf16>
    %cst_14 = arith.constant dense<0.000000e+00> : vector<8x128xf32>
    %22 = tpu.matmul %19, %21, %cst_14 {dimension_numbers = #tpu.dot_dimension_numbers<[1], [0], [0], [1], [0, 0, 1, 1], [], []>} : vector<8x64xbf16>, vector<64x128xbf16>, vector<8x128xf32> -> vector<8x128xf32>
    %c0_15 = arith.constant 0 : index
    %c0_16 = arith.constant 0 : index
    %23 = vector.load %arg7[%c0_15, %c0_16] : memref<1x128xf32, #tpu.memory_space<vmem>>, vector<1x128xf32>
    %24 = vector.broadcast %23 : vector<1x128xf32> to vector<8x128xf32>
    %25 = arith.addf %22, %24 : vector<8x128xf32>
    %cst_17 = arith.constant dense<0xFF800000> : vector<8xf32>
    %26 = vector.multi_reduction <maximumf>, %25, %cst_17 [1] : vector<8x128xf32> to vector<8xf32>
    %27 = vector.shape_cast %26 : vector<8xf32> to vector<8x1xf32>
    %28 = vector.broadcast %27 : vector<8x1xf32> to vector<8x128xf32>
    %29 = arith.subf %25, %28 : vector<8x128xf32>
    %30 = math.exp %29 : vector<8x128xf32>
    %cst_18 = arith.constant dense<0.000000e+00> : vector<8xf32>
    %31 = vector.multi_reduction <add>, %30, %cst_18 [1] : vector<8x128xf32> to vector<8xf32>
    %32 = vector.shape_cast %31 : vector<8xf32> to vector<8x1xf32>
    %33 = math.log %32 : vector<8x1xf32>
    %34 = vector.broadcast %33 : vector<8x1xf32> to vector<8x128xf32>
    %35 = arith.subf %29, %34 : vector<8x128xf32>
    %36 = arith.truncf %35 : vector<8x128xf32> to vector<8x128xbf16>
    %c0_19 = arith.constant 0 : index
    %c0_20 = arith.constant 0 : index
    %37 = vector.load %arg8[%c0_19, %c0_20] : memref<8x128xbf16, #tpu.memory_space<vmem>>, vector<8x128xbf16>
    tpu.vector_store %arg8[%c0_19, %c0_20], %36 {strides = array<i32>} : memref<8x128xbf16, #tpu.memory_space<vmem>>, vector<8x128xbf16>,
    return
  }
  func.func @transform_0(%arg0: i32) -> (i32, i32) {
    %c0_i32 = arith.constant 0 : i32
    %c0_i32_0 = arith.constant 0 : i32
    return %arg0, %c0_i32 : i32, i32
  }
  func.func @transform_1(%arg0: i32) -> (i32, i32) {
    %c0_i32 = arith.constant 0 : i32
    %c0_i32_0 = arith.constant 0 : i32
    %c0_i32_1 = arith.constant 0 : i32
    return %c0_i32, %c0_i32_0 : i32, i32
  }
  func.func @transform_2(%arg0: i32) -> (i32, i32) {
    %c0_i32 = arith.constant 0 : i32
    %c0_i32_0 = arith.constant 0 : i32
    %c0_i32_1 = arith.constant 0 : i32
    return %c0_i32, %c0_i32_0 : i32, i32
  }
  func.func @transform_3(%arg0: i32) -> (i32, i32) {
    %c0_i32 = arith.constant 0 : i32
    %c0_i32_0 = arith.constant 0 : i32
    %c0_i32_1 = arith.constant 0 : i32
    return %c0_i32, %c0_i32_0 : i32, i32
  }
  func.func @transform_4(%arg0: i32) -> (i32, i32) {
    %c0_i32 = arith.constant 0 : i32
    %c0_i32_0 = arith.constant 0 : i32
    %c0_i32_1 = arith.constant 0 : i32
    return %c0_i32, %c0_i32_0 : i32, i32
  }
  func.func @transform_5(%arg0: i32) -> (i32, i32) {
    %c0_i32 = arith.constant 0 : i32
    %c0_i32_0 = arith.constant 0 : i32
    %c0_i32_1 = arith.constant 0 : i32
    return %c0_i32, %c0_i32_0 : i32, i32
  }
  func.func @transform_6(%arg0: i32) -> (i32, i32) {
    %c0_i32 = arith.constant 0 : i32
    %c0_i32_0 = arith.constant 0 : i32
    %c0_i32_1 = arith.constant 0 : i32
    return %c0_i32, %c0_i32_0 : i32, i32
  }
  func.func @transform_7(%arg0: i32) -> (i32, i32) {
    %c0_i32 = arith.constant 0 : i32
    %c0_i32_0 = arith.constant 0 : i32
    return %arg0, %c0_i32 : i32, i32
  }
}

</mosaic_0001>

<bundles_post_ra>
// kernel: tpu_custom_call.1
= control target key start
LH: loop header
LB: loop body
LE: loop exit
PB: predicated region body
PF: predicated region fallthrough
CT: control target
= control target key end

     0   :  { %12 = vsyncpa [#allocation3], 0  ;;  %s913_s0 = inlined_call_operand.vmem [shape: f32[8,784], index: 0, kind: input, shape index: {}]   ;;  %s914_s1 = inlined_call_operand.hbm [shape: f32[784,128], index: 1, kind: input, shape index: {}]   ;;  %s915_s2 = inlined_call_operand.vmem [shape: f32[1,128], index: 2, kind: input, shape index: {}]   ;;  %s916_s3 = inlined_call_operand.vmem [shape: f32[128,64], index: 3, kind: input, shape index: {}]   ;;  %s917_s4 = inlined_call_operand.vmem [shape: f32[1,64], index: 4, kind: input, shape index: {}]   ;;  %s918_s5 = inlined_call_operand.vmem [shape: f32[64,128], index: 5, kind: input, shape index: {}]   ;;  %s919_s6 = inlined_call_operand.vmem [shape: f32[1,128], index: 6, kind: input, shape index: {}]   ;;  %s920_s7 = inlined_call_operand.hbm [shape: bf16[8,128], index: 7, kind: output, shape index: {}]  }
   0x1   :  { %13 = vsyncpa [#allocation4], 0  ;;  %s722_s24 = smov [#allocation2]   ;;  %s674_s28 = scalar_lea.hbm %s914_s1, 12544 }
   0x2   :  { %s21_s25 = sshll.u32 %s722_s24, 4  ;;  %p675_p0 = scmp.ne.s32.totalorder %s914_s1, %s674_s28  ;;  %s22_s25 = int_to_ptr.vmem [resolvable:$true] %s21_s25 }
   0x3   :  { %p678_p1 = scmp.lt.u32.totalorder %s674_s28, %s914_s1 }
   0x5   :  { %p680_p2 = pnand %p678_p1, %p675_p0 }
   0x7   :  { %683 = shalt.err (!%p680_p2)
}
   0x8   :  { %s684_s10 = scalar_lea.vmem %s22_s25, 12544  ;;  %p689_p4 = scmp.lt.s32.totalorder %s22_s25, %s22_s25 }
   0x9   :  { %p685_p3 = scmp.ne.s32.totalorder %s22_s25, %s684_s10  ;;  %p690_p5 = scmp.lt.s32.totalorder %s684_s10, %s684_s10 }
   0xb   :  { %p691_p6 = por %p690_p5, %p689_p4 }
   0xd   :  { %p692_p7 = pnand %p691_p6, %p685_p3 }
   0xf   :  { %695 = shalt.err (!%p692_p7)
}
  0x10   :  { %s723_s11 = smov 128   ;;  %s724_s12 = smov 8  }
  0x11   :  { %27 = dma.hbm_to_vmem [thread:$0]  %s914_s1, 12544, %s22_s25, [#allocation3], %s723_s11, %s723_s11, %s724_s12  }
  0x12   :  { %718 = dma.done.wait [#allocation3], 12544  }
  0x13   :  { %719 = vsyncadd [#allocation3], 4294954752  ;;  %v72_v0 = vld [vmem:[#allocation2 + $0x80] sm:$0xff]  ;;  %v73_v1 = vld [vmem:[#allocation2 + $0x88] sm:$0xff]  ;;  %vm726_vm0 = vmmov 0   ;;  %vm210_vm1 = vcmask 130048  }
  0x14   :  { %v56_v2 = vld [vmem:[#allocation2] sm:$0xff]  ;;  %v162_v3 = vpack.c.bf16 %v73_v1, %v72_v0  ;;  %v57_v4 = vld [vmem:[#allocation2 + $0x8] sm:$0xff]  ;;  %v74_v11 = vld [vmem:[#allocation2 + $0x90] sm:$0xff]  ;;  %vm468_vm2 = vcmask 523264  }
  0x15   :  { %v104_v5 = vld [vmem:[#allocation2 + $0x180] sm:$0xff]  ;;  %v105_v6 = vld [vmem:[#allocation2 + $0x188] sm:$0xff]  ;;  %v154_v7 = vpack.c.bf16 %v57_v4, %v56_v2  ;;  %v75_v13 = vld [vmem:[#allocation2 + $0x98] sm:$0xff] }
  0x16   :  { %v178_v8 = vpack.c.bf16 %v105_v6, %v104_v5  ;;  %v88_v9 = vld [vmem:[#allocation2 + $0x100] sm:$0xff]  ;;  %v89_v10 = vld [vmem:[#allocation2 + $0x108] sm:$0xff]  ;;  %544 = vmatprep.subr.bf16.mxu0 %v162_v3  ;;  %v58_v14 = vld [vmem:[#allocation2 + $0x10] sm:$0xff]  ;;  %v163_v16 = vpack.c.bf16 %v75_v13, %v74_v11 }
  0x17   :  { %v170_v12 = vpack.c.bf16 %v89_v10, %v88_v9  ;;  %v59_v15 = vld [vmem:[#allocation2 + $0x18] sm:$0xff]  ;;  %545 = vmatpush3.bf16.msra.mxu0 %v154_v7  ;;  %v106_v18 = vld [vmem:[#allocation2 + $0x190] sm:$0xff]  ;;  %v76_v23 = vld [vmem:[#allocation2 + $0xa0] sm:$0xff] }
  0x18   :  { %566 = vmatprep.subr.bf16.mxu1 %v178_v8  ;;  %v155_v17 = vpack.c.bf16 %v59_v15, %v58_v14  ;;  %v107_v19 = vld [vmem:[#allocation2 + $0x198] sm:$0xff]  ;;  %v90_v20 = vld [vmem:[#allocation2 + $0x110] sm:$0xff]  ;;  %v77_v24 = vld [vmem:[#allocation2 + $0xa8] sm:$0xff]  ;;  %546 = vmatprep.subr.bf16.mxu0 %v163_v16 }
  0x19   :  { %567 = vmatpush3.bf16.msra.mxu1 %v170_v12  ;;  %v179_v21 = vpack.c.bf16 %v107_v19, %v106_v18  ;;  %v91_v22 = vld [vmem:[#allocation2 + $0x118] sm:$0xff]  ;;  %v164_v26 = vpack.c.bf16 %v77_v24, %v76_v23  ;;  %v60_v27 = vld [vmem:[#allocation2 + $0x20] sm:$0xff]  ;;  %v61_v28 = vld [vmem:[#allocation2 + $0x28] sm:$0xff] }
  0x1a   :  { %v171_v25 = vpack.c.bf16 %v91_v22, %v90_v20  ;;  %v108_v29 = vld [vmem:[#allocation2 + $0x1a0] sm:$0xff]  ;;  %v109_v30 = vld [vmem:[#allocation2 + $0x1a8] sm:$0xff]  ;;  %v156_v33 = vpack.c.bf16 %v61_v28, %v60_v27  ;;  %v78_v35 = vld [vmem:[#allocation2 + $0xb0] sm:$0xff] }
  0x1b   :  { %568 = vmatprep.subr.bf16.mxu1 %v179_v21  ;;  %v92_v31 = vld [vmem:[#allocation2 + $0x120] sm:$0xff]  ;;  %v93_v32 = vld [vmem:[#allocation2 + $0x128] sm:$0xff]  ;;  %547 = vmatpush3.bf16.msra.mxu0 %v155_v17  ;;  %v180_v34 = vpack.c.bf16 %v109_v30, %v108_v29  ;;  %v79_v36 = vld [vmem:[#allocation2 + $0xb8] sm:$0xff] }
  0x1c   :  { %v62_v37 = vld [vmem:[#allocation2 + $0x30] sm:$0xff]  ;;  %548 = vmatprep.subr.bf16.mxu0 %v164_v26  ;;  %v172_v38 = vpack.c.bf16 %v93_v32, %v92_v31  ;;  %v165_v39 = vpack.c.bf16 %v79_v36, %v78_v35  ;;  %v63_v40 = vld [vmem:[#allocation2 + $0x38] sm:$0xff]  ;;  %v80_v46 = vld [vmem:[#allocation2 + $0xc0] sm:$0xff] }
  0x1d   :  { %569 = vmatpush3.bf16.msra.mxu1 %v171_v25  ;;  %v110_v41 = vld [vmem:[#allocation2 + $0x1b0] sm:$0xff]  ;;  %v111_v42 = vld [vmem:[#allocation2 + $0x1b8] sm:$0xff]  ;;  %v81_v47 = vld [vmem:[#allocation2 + $0xc8] sm:$0xff]  ;;  %v157_v48 = vpack.c.bf16 %v63_v40, %v62_v37 }
  0x1e   :  { %570 = vmatprep.subr.bf16.mxu1 %v180_v34  ;;  %v181_v43 = vpack.c.bf16 %v111_v42, %v110_v41  ;;  %v94_v44 = vld [vmem:[#allocation2 + $0x130] sm:$0xff]  ;;  %v95_v45 = vld [vmem:[#allocation2 + $0x138] sm:$0xff]  ;;  %v112_v49 = vld [vmem:[#allocation2 + $0x1c0] sm:$0xff]  ;;  %v166_v52 = vpack.c.bf16 %v81_v47, %v80_v46 }
  0x1f   :  { %549 = vmatpush3.bf16.msra.mxu0 %v156_v33  ;;  %v113_v50 = vld [vmem:[#allocation2 + $0x1c8] sm:$0xff]  ;;  %v173_v51 = vpack.c.bf16 %v95_v45, %v94_v44  ;;  %v64_v53 = vld [vmem:[#allocation2 + $0x40] sm:$0xff]  ;;  %v82_v58 = vld [vmem:[#allocation2 + $0xd0] sm:$0xff] }
  0x20   :  { %550 = vmatprep.subr.bf16.mxu0 %v165_v39  ;;  %v65_v54 = vld [vmem:[#allocation2 + $0x48] sm:$0xff]  ;;  %v96_v55 = vld [vmem:[#allocation2 + $0x140] sm:$0xff]  ;;  %v182_v56 = vpack.c.bf16 %v113_v50, %v112_v49  ;;  %v83_v59 = vld [vmem:[#allocation2 + $0xd8] sm:$0xff] }
  0x21   :  { %571 = vmatpush3.bf16.msra.mxu1 %v172_v38  ;;  %v97_v57 = vld [vmem:[#allocation2 + $0x148] sm:$0xff]  ;;  %v114_v60 = vld [vmem:[#allocation2 + $0x1d0] sm:$0xff]  ;;  %v115_v61 = vld [vmem:[#allocation2 + $0x1d8] sm:$0xff]  ;;  %v158_v62 = vpack.c.bf16 %v65_v54, %v64_v53  ;;  %v167_v0 = vpack.c.bf16 %v83_v59, %v82_v58 }
  0x22   :  { %572 = vmatprep.subr.bf16.mxu1 %v181_v43  ;;  %v174_v63 = vpack.c.bf16 %v97_v57, %v96_v55  ;;  %v66_v1 = vld [vmem:[#allocation2 + $0x50] sm:$0xff]  ;;  %v67_v2 = vld [vmem:[#allocation2 + $0x58] sm:$0xff]  ;;  %v183_v4 = vpack.c.bf16 %v115_v61, %v114_v60  ;;  %v84_v6 = vld [vmem:[#allocation2 + $0xe0] sm:$0xff]  ;;  %v725_v55 = vmov 0.0  }
  0x23   :  { %551 = vmatpush3.bf16.msra.mxu0 %v157_v48  ;;  %v98_v3 = vld [vmem:[#allocation2 + $0x150] sm:$0xff]  ;;  %v99_v5 = vld [vmem:[#allocation2 + $0x158] sm:$0xff]  ;;  %v85_v7 = vld [vmem:[#allocation2 + $0xe8] sm:$0xff]  ;;  %v159_v10 = vpack.c.bf16 %v67_v2, %v66_v1 }
  0x24   :  { %552 = vmatprep.subr.bf16.mxu0 %v166_v52  ;;  %v116_v8 = vld [vmem:[#allocation2 + $0x1e0] sm:$0xff]  ;;  %v117_v9 = vld [vmem:[#allocation2 + $0x1e8] sm:$0xff]  ;;  %v175_v13 = vpack.c.bf16 %v99_v5, %v98_v3  ;;  %v168_v14 = vpack.c.bf16 %v85_v7, %v84_v6  ;;  %v86_v20 = vld [vmem:[#allocation2 + $0xf0] sm:$0xff] }
  0x25   :  { %573 = vmatpush3.bf16.msra.mxu1 %v173_v51  ;;  %v68_v11 = vld [vmem:[#allocation2 + $0x60] sm:$0xff]  ;;  %v43_v12 = vld [vmem:[%s913_s0 + $0x8] sm:$0xff]  ;;  %v184_v19 = vpack.c.bf16 %v117_v9, %v116_v8  ;;  %v87_v21 = vld [vmem:[#allocation2 + $0xf8] sm:$0xff] }
  0x26   :  { %574 = vmatprep.subr.bf16.mxu1 %v182_v56  ;;  %v69_v15 = vld [vmem:[#allocation2 + $0x68] sm:$0xff]  ;;  %v100_v16 = vld [vmem:[#allocation2 + $0x160] sm:$0xff]  ;;  %v50_v18 = vpack.c.bf16 %v43_v12, %v43_v12  ;;  %v45_v22 = vld [vmem:[%s913_s0 + $0x18] sm:$0xff]  ;;  %v169_v28 = vpack.c.bf16 %v87_v21, %v86_v20 }
  0x27   :  { %553 = vmatpush3.bf16.msra.mxu0 %v158_v62  ;;  %v101_v17 = vld [vmem:[#allocation2 + $0x168] sm:$0xff]  ;;  %v118_v23 = vld [vmem:[#allocation2 + $0x1f0] sm:$0xff]  ;;  %v119_v24 = vld [vmem:[#allocation2 + $0x1f8] sm:$0xff]  ;;  %v52_v25 = vpack.c.bf16 %v45_v22, %v45_v22  ;;  %v160_v26 = vpack.c.bf16 %v69_v15, %v68_v11 }
  0x28   :  { %554 = vmatprep.subr.bf16.mxu0 %v167_v0  ;;  %246 = vmatprep.mubr.bf16.mxu0 %v50_v18  ;;  %v176_v27 = vpack.c.bf16 %v101_v17, %v100_v16  ;;  %v70_v29 = vld [vmem:[#allocation2 + $0x70] sm:$0xff]  ;;  %v71_v30 = vld [vmem:[#allocation2 + $0x78] sm:$0xff]  ;;  %v185_v32 = vpack.c.bf16 %v119_v24, %v118_v23  ;;  %v136_v34 = vld [vmem:[#allocation2 + $0x280] sm:$0xff] }
  0x29   :  { %575 = vmatpush3.bf16.msra.mxu1 %v174_v63  ;;  %v102_v31 = vld [vmem:[#allocation2 + $0x170] sm:$0xff]  ;;  %v103_v33 = vld [vmem:[#allocation2 + $0x178] sm:$0xff]  ;;  %v137_v35 = vld [vmem:[#allocation2 + $0x288] sm:$0xff]  ;;  %286 = vmatprep.mubr.bf16.mxu1 %v52_v25  ;;  %v161_v36 = vpack.c.bf16 %v71_v30, %v70_v29 }
  0x2a   :  { %576 = vmatprep.subr.bf16.mxu1 %v183_v4  ;;  %v42_v37 = vld [vmem:[%s913_s0] sm:$0xff]  ;;  %v177_v38 = vpack.c.bf16 %v103_v33, %v102_v31  ;;  %v194_v39 = vpack.c.bf16 %v137_v35, %v136_v34  ;;  %v121_v41 = vld [vmem:[#allocation2 + $0x208] sm:$0xff]  ;;  %v44_v42 = vld [vmem:[%s913_s0 + $0x10] sm:$0xff] }
  0x2b   :  { %555 = vmatpush3.bf16.msra.mxu0 %v159_v10  ;;  %v120_v40 = vld [vmem:[#allocation2 + $0x200] sm:$0xff]  ;;  %v138_v43 = vld [vmem:[#allocation2 + $0x290] sm:$0xff]  ;;  %v139_v44 = vld [vmem:[#allocation2 + $0x298] sm:$0xff]  ;;  %v49_v45 = vpack.c.bf16 %v42_v37, %v42_v37  ;;  %v51_v47 = vpack.c.bf16 %v44_v42, %v44_v42 }
  0x2c   :  { %556 = vmatprep.subr.bf16.mxu0 %v168_v14  ;;  %v186_v46 = vpack.c.bf16 %v121_v41, %v120_v40  ;;  %v122_v48 = vld [vmem:[#allocation2 + $0x210] sm:$0xff]  ;;  %v195_v49 = vpack.c.bf16 %v139_v44, %v138_v43  ;;  %v123_v50 = vld [vmem:[#allocation2 + $0x218] sm:$0xff]  ;;  %v152_v51 = vld [vmem:[#allocation2 + $0x300] sm:$0xff] }
  0x2d   :  { %577 = vmatpush3.bf16.msra.mxu1 %v175_v13  ;;  %v153_v52 = vld [vmem:[#allocation2 + $0x308] sm:$0xff]  ;;  %v140_v53 = vld [vmem:[#allocation2 + $0x2a0] sm:$0xff]  ;;  %v187_v59 = vpack.c.bf16 %v123_v50, %v122_v48  ;;  %v48_v63 = vld [vmem:[%s913_s0 + $0x30] sm:$0xff] }
  0x2e   :  { %578 = vmatprep.subr.bf16.mxu1 %v184_v19  ;;  %v141_v54 = vld [vmem:[#allocation2 + $0x2a8] sm:$0xff]  ;;  %v202_v56 = vpack.c.bf16 %v153_v52, %v152_v51  ;;  %v124_v61 = vld [vmem:[#allocation2 + $0x220] sm:$0xff]  ;;  %v142_v0 = vld [vmem:[#allocation2 + $0x2b0] sm:$0xff]  ;;  %v55_v3 = vpack.c.bf16 %v48_v63, %v48_v63 }
  0x2f   :  { %557 = vmatpush3.bf16.msra.mxu0 %v160_v26  ;;  %v47_v57 = vld [vmem:[%s913_s0 + $0x28] sm:$0xff]  ;;  %v196_v60 = vpack.c.bf16 %v141_v54, %v140_v53  ;;  %v143_v1 = vld [vmem:[#allocation2 + $0x2b8] sm:$0xff]  ;;  %v126_v5 = vld [vmem:[#allocation2 + $0x230] sm:$0xff] }
  0x30   :  { %558 = vmatprep.subr.bf16.mxu0 %v169_v28  ;;  %v54_v58 = vpack.c.bf16 %v47_v57, %v47_v57  ;;  %v125_v62 = vld [vmem:[#allocation2 + $0x228] sm:$0xff]  ;;  %v197_v4 = vpack.c.bf16 %v143_v1, %v142_v0  ;;  %v127_v6 = vld [vmem:[#allocation2 + $0x238] sm:$0xff]  ;;  %v144_v7 = vld [vmem:[#allocation2 + $0x2c0] sm:$0xff] }
  0x31   :  { %579 = vmatpush3.bf16.msra.mxu1 %v176_v27  ;;  %v188_v2 = vpack.c.bf16 %v125_v62, %v124_v61  ;;  %v145_v8 = vld [vmem:[#allocation2 + $0x2c8] sm:$0xff]  ;;  %v189_v9 = vpack.c.bf16 %v127_v6, %v126_v5  ;;  %v128_v11 = vld [vmem:[#allocation2 + $0x240] sm:$0xff]  ;;  %v146_v13 = vld [vmem:[#allocation2 + $0x2d0] sm:$0xff] }
  0x32   :  { %580 = vmatprep.subr.bf16.mxu1 %v185_v32  ;;  %v198_v10 = vpack.c.bf16 %v145_v8, %v144_v7  ;;  %v129_v12 = vld [vmem:[#allocation2 + $0x248] sm:$0xff]  ;;  %v147_v14 = vld [vmem:[#allocation2 + $0x2d8] sm:$0xff]  ;;  %v130_v17 = vld [vmem:[#allocation2 + $0x250] sm:$0xff] }
  0x33   :  { %559 = vmatpush3.bf16.msra.mxu0 %v161_v36  ;;  %v190_v15 = vpack.c.bf16 %v129_v12, %v128_v11  ;;  %v199_v16 = vpack.c.bf16 %v147_v14, %v146_v13  ;;  %v131_v18 = vld [vmem:[#allocation2 + $0x258] sm:$0xff]  ;;  %v148_v19 = vld [vmem:[#allocation2 + $0x2e0] sm:$0xff]  ;;  %v149_v20 = vld [vmem:[#allocation2 + $0x2e8] sm:$0xff] }
  0x34   :  { %588 = vmatprep.subr.bf16.mxu0 %v194_v39  ;;  %v191_v21 = vpack.c.bf16 %v131_v18, %v130_v17  ;;  %v200_v22 = vpack.c.bf16 %v149_v20, %v148_v19  ;;  %v132_v23 = vld [vmem:[#allocation2 + $0x260] sm:$0xff]  ;;  %v133_v24 = vld [vmem:[#allocation2 + $0x268] sm:$0xff]  ;;  %v150_v25 = vld [vmem:[#allocation2 + $0x2f0] sm:$0xff] }
  0x35   :  { %581 = vmatpush3.bf16.msra.mxu1 %v177_v38  ;;  %v151_v26 = vld [vmem:[#allocation2 + $0x2f8] sm:$0xff]  ;;  %v192_v27 = vpack.c.bf16 %v133_v24, %v132_v23  ;;  %v134_v29 = vld [vmem:[#allocation2 + $0x270] sm:$0xff]  ;;  %v46_v32 = vld [vmem:[%s913_s0 + $0x20] sm:$0xff] }
  0x36   :  { %626 = vmatprep.subr.bf16.mxu1 %v725_v55  ;;  %247 = vmatmul.mubr.bf16.vlgmr.msra.gmra.mrb[0].mxu0 %v49_v45  ;;  %v201_v28 = vpack.c.bf16 %v151_v26, %v150_v25  ;;  %v135_v30 = vld [vmem:[#allocation2 + $0x278] sm:$0xff]  ;;  %v53_v33 = vpack.c.bf16 %v46_v32, %v46_v32  ;;  %v376_v34 = vld [vmem:[%s916_s3] sm:$0xff]  ;;  %v377_v35 = vld [vmem:[%s916_s3 + $0x8] sm:$0xff] }
  0x37   :  { %589 = vmatpush3.bf16.msra.mxu0 %v186_v46  ;;  %326 = vmatprep.mubr.bf16.mxu0 %v54_v58  ;;  %v193_v31 = vpack.c.bf16 %v135_v30, %v134_v29  ;;  %v378_v36 = vld [vmem:[%s916_s3 + $0x10] sm:$0xff]  ;;  %v392_v37 = vpack.c.bf16 %v377_v35, %v376_v34  ;;  %v379_v38 = vld [vmem:[%s916_s3 + $0x18] sm:$0xff]  ;;  %v380_v40 = vld [vmem:[%s916_s3 + $0x20] sm:$0xff] }
  0x38   :  { %287 = vmatmul.mubr.bf16.vlgmr.msra.gmra.mrb[0].mxu1 %v51_v47  ;;  %590 = vmatprep.subr.bf16.mxu0 %v195_v49  ;;  %v393_v39 = vpack.c.bf16 %v379_v38, %v378_v36  ;;  %v381_v41 = vld [vmem:[%s916_s3 + $0x28] sm:$0xff]  ;;  %v382_v43 = vld [vmem:[%s916_s3 + $0x30] sm:$0xff]  ;;  %v383_v44 = vld [vmem:[%s916_s3 + $0x38] sm:$0xff] }
  0x39   :  { %627 = vmatpush3.bf16.msra.mxu1 %v202_v56  ;;  %628 = vmatprep.mubr.msk.bf16.mxu1 %vm726_vm0, %v725_v55  ;;  %v394_v42 = vpack.c.bf16 %v381_v41, %v380_v40  ;;  %v395_v45 = vpack.c.bf16 %v383_v44, %v382_v43  ;;  %v384_v46 = vld [vmem:[%s916_s3 + $0x40] sm:$0xff]  ;;  %v385_v47 = vld [vmem:[%s916_s3 + $0x48] sm:$0xff]  ;;  %v386_v49 = vld [vmem:[%s916_s3 + $0x50] sm:$0xff] }
  0x3a   :  { %632 = vmatprep.subr.bf16.mxu1 %v725_v55  ;;  %v396_v48 = vpack.c.bf16 %v385_v47, %v384_v46  ;;  %v387_v50 = vld [vmem:[%s916_s3 + $0x58] sm:$0xff]  ;;  %v388_v52 = vld [vmem:[%s916_s3 + $0x60] sm:$0xff]  ;;  %v389_v53 = vld [vmem:[%s916_s3 + $0x68] sm:$0xff] }
  0x3b   :  { %591 = vmatpush3.bf16.msra.mxu0 %v187_v59  ;;  %v397_v51 = vpack.c.bf16 %v387_v50, %v386_v49  ;;  %v398_v54 = vpack.c.bf16 %v389_v53, %v388_v52  ;;  %v390_v56 = vld [vmem:[%s916_s3 + $0x70] sm:$0xff]  ;;  %v391_v57 = vld [vmem:[%s916_s3 + $0x78] sm:$0xff]  ;;  %v449_v59 = vld [vmem:[%s918_s5] sm:$0xff] }
  0x3c   :  { %592 = vmatprep.subr.bf16.mxu0 %v196_v60  ;;  %v399_v58 = vpack.c.bf16 %v391_v57, %v390_v56  ;;  %v450_v60 = vld [vmem:[%s918_s5 + $0x8] sm:$0xff]  ;;  %v451_v61 = vld [vmem:[%s918_s5 + $0x10] sm:$0xff]  ;;  %v452_v63 = vld [vmem:[%s918_s5 + $0x18] sm:$0xff] }
  0x3d   :  { %v457_v62 = vpack.c.bf16 %v450_v60, %v449_v59  ;;  %v458_v0 = vpack.c.bf16 %v452_v63, %v451_v61  ;;  %v455_v30 = vld [vmem:[%s918_s5 + $0x30] sm:$0xff]  ;;  %v542_v40 = vld [vmem:[%s919_s6] ss:$0 sm:$0xff] }
  0x3f   :  { %593 = vmatpush3.bf16.msra.mxu0 %v188_v2  ;;  %v539_v2 = vld [vmem:[%s915_s2] ss:$0 sm:$0xff] }
  0x40   :  { %629 = vmatmul.mubr.msk.bf16.vlgmr.msra.gmra.mrb[4].mxu1 %vm210_vm1, %v55_v3  ;;  %594 = vmatprep.subr.bf16.mxu0 %v197_v4 }
  0x41   :  { %648 = vmatprep.mubr.msk.bf16.mxu1 %vm726_vm0, %v725_v55  ;;  %633 = vmatpush3.bf16.msra.mxu1 %v392_v37 }
  0x42   :  { %634 = vmatprep.subr.bf16.mxu1 %v725_v55 }
  0x43   :  { %595 = vmatpush3.bf16.msra.mxu0 %v189_v9 }
  0x44   :  { %596 = vmatprep.subr.bf16.mxu0 %v198_v10 }
  0x45   :  { %635 = vmatpush3.bf16.msra.mxu1 %v393_v39 }
  0x46   :  { %636 = vmatprep.subr.bf16.mxu1 %v725_v55 }
  0x47   :  { %597 = vmatpush3.bf16.msra.mxu0 %v190_v15 }
  0x48   :  { %598 = vmatprep.subr.bf16.mxu0 %v199_v16 }
  0x49   :  { %637 = vmatpush3.bf16.msra.mxu1 %v394_v42 }
  0x4a   :  { %638 = vmatprep.subr.bf16.mxu1 %v725_v55 }
  0x4b   :  { %599 = vmatpush3.bf16.msra.mxu0 %v191_v21 }
  0x4c   :  { %600 = vmatprep.subr.bf16.mxu0 %v200_v22 }
  0x4d   :  { %639 = vmatpush3.bf16.msra.mxu1 %v395_v45 }
  0x4e   :  { %640 = vmatprep.subr.bf16.mxu1 %v725_v55 }
  0x4f   :  { %601 = vmatpush3.bf16.msra.mxu0 %v192_v27  ;;  %v453_v27 = vld [vmem:[%s918_s5 + $0x20] sm:$0xff] }
  0x50   :  { %602 = vmatprep.subr.bf16.mxu0 %v201_v28  ;;  %v454_v28 = vld [vmem:[%s918_s5 + $0x28] sm:$0xff] }
  0x51   :  { %641 = vmatpush3.bf16.msra.mxu1 %v396_v48  ;;  %v459_v29 = vpack.c.bf16 %v454_v28, %v453_v27 }
  0x52   :  { %642 = vmatprep.subr.bf16.mxu1 %v725_v55 }
  0x53   :  { %603 = vmatpush3.bf16.msra.mxu0 %v193_v31  ;;  %v456_v31 = vld [vmem:[%s918_s5 + $0x38] sm:$0xff] }
  0x54   :  { %652 = vmatprep.subr.bf16.mxu0 %v725_v55  ;;  %v460_v32 = vpack.c.bf16 %v456_v31, %v455_v30 }
  0x55   :  { %643 = vmatpush3.bf16.msra.mxu1 %v397_v51 }
  0x56   :  { %327 = vmatmul.mubr.bf16.vlgmr.msra.gmra.mrb[4].mxu0 %v53_v33  ;;  %644 = vmatprep.subr.bf16.mxu1 %v725_v55  ;;  %v541_v33 = vld [vmem:[%s917_s4] ss:$0 sm:$0xff]  ;;  %s727_s4 = smov [#allocation5]  }
  0x57   :  { %660 = vmatprep.mubr.msk.bf16.mxu0 %vm726_vm0, %v725_v55  ;;  %653 = vmatpush3.bf16.msra.mxu0 %v457_v62  ;;  %s530_s5 = sshll.u32 %s727_s4, 4  ;;  %s531_s5 = int_to_ptr.vmem [resolvable:$true] %s530_s5 }
  0x58   :  { %654 = vmatprep.subr.bf16.mxu0 %v725_v55  ;;  %s696_s6 = scalar_lea.vmem %s531_s5, 64  ;;  %p701_p9 = scmp.lt.s32.totalorder %s531_s5, %s531_s5 }
  0x59   :  { %645 = vmatpush3.bf16.msra.mxu1 %v398_v54  ;;  %p697_p8 = scmp.ne.s32.totalorder %s531_s5, %s696_s6  ;;  %p702_p10 = scmp.lt.s32.totalorder %s696_s6, %s696_s6 }
  0x5a   :  { %646 = vmatprep.subr.bf16.mxu1 %v725_v55 }
  0x5b   :  { %655 = vmatpush3.bf16.msra.mxu0 %v458_v0  ;;  %p703_p11 = por %p702_p10, %p701_p9 }
  0x5c   :  { %656 = vmatprep.subr.bf16.mxu0 %v725_v55 }
  0x5d   :  { %647 = vmatpush3.bf16.msra.mxu1 %v399_v58  ;;  %p704_p12 = pnand %p703_p11, %p697_p8 }
  0x5f   :  { %657 = vmatpush3.bf16.msra.mxu0 %v459_v29 }
  0x60   :  { %658 = vmatprep.subr.bf16.mxu0 %v725_v55 }
  0x63   :  { %659 = vmatpush3.bf16.msra.mxu0 %v460_v32 }
 0x109   :  { %v560_v1 = vpop.f32.mrb[0].mxu0 }
 0x10a   :  { %v561_v3 = vpop.f32.mrb[1].mxu0 }
 0x10b   :  { %v582_v4 = vpop.f32.mrb[0].mxu1  ;;  %v562_v5 = vadd.f32 %v561_v3, %v560_v1  ;;  %v563_v6 = vpop.f32.mrb[2].mxu0 }
 0x10c   :  { %v583_v7 = vpop.f32.mrb[1].mxu1  ;;  %v564_v8 = vpop.f32.mrb[3].mxu0 }
 0x10d   :  { %v584_v9 = vadd.f32 %v583_v7, %v582_v4  ;;  %v585_v10 = vpop.f32.mrb[2].mxu1  ;;  %v249_v11 = vadd.f32 %v562_v5, %v539_v2 }
 0x10e   :  { %v586_v12 = vpop.f32.mrb[3].mxu1 }
 0x10f   :  { %v289_v13 = vadd.f32 %v584_v9, %v249_v11 }
 0x113   :  { %v368_v14 = vpop.f32.mrb[4].mxu1 }
 0x114   :  { %v630_v15 = vpop.f32.mrb[5].mxu1 }
 0x115   :  { %v371_v16 = vpop.f32.mrb[6].mxu1 }
 0x116   :  { %v631_v17 = vpop.f32.mrb[7].mxu1 }
 0x129   :  { %v604_v18 = vpop.f32.mrb[4].mxu0 }
 0x12a   :  { %v605_v19 = vpop.f32.mrb[5].mxu0 }
 0x12b   :  { %v606_v20 = vadd.f32 %v605_v19, %v604_v18  ;;  %v607_v21 = vpop.f32.mrb[6].mxu0 }
 0x12c   :  { %v608_v22 = vpop.f32.mrb[7].mxu0 }
 0x12d   :  { %v329_v23 = vadd.f32 %v606_v20, %v289_v13 }
 0x12f   :  { %v369_v24 = vadd.f32 %v368_v14, %v329_v23 }
 0x131   :  { %v374_v25 = vmax.f32 %v369_v24, 0.0 }
 0x133   :  { %v375_v26 = vpack.c.bf16 %v374_v25, %v374_v25 }
 0x135   :  { %649 = vmatmul.mubr.bf16.vlgmr.msra.gmra.mrb[8].mxu1 %v375_v26 }
 0x208   :  { %v441_v34 = vpop.f32.mrb[8].mxu1 }
 0x209   :  { %v442_v35 = vadd.f32 %v541_v33, %v441_v34  ;;  %v650_v36 = vpop.f32.mrb[9].mxu1 }
 0x20a   :  { %v444_v37 = vpop.f32.mrb[10].mxu1 }
 0x20b   :  { %v447_v38 = vmax.f32 %v442_v35, 0.0  ;;  %v651_v55 = vpop.f32.mrb[11].mxu1 }
 0x20d   :  { %v448_v39 = vpack.c.bf16 %v447_v38, %v447_v38 }
 0x20f   :  { %661 = vmatmul.mubr.msk.bf16.vlgmr.msra.gmra.mrb[8].mxu0 %vm468_vm2, %v448_v39 }
 0x2e2   :  { %v506_v41 = vpop.f32.mrb[8].mxu0 }
 0x2e3   :  { %v507_v42 = vadd.f32 %v542_v40, %v506_v41  ;;  %v662_v43 = vpop.f32.mrb[9].mxu0 }
 0x2e4   :  { %v509_v44 = vpop.f32.mrb[10].mxu0 }
 0x2e5   :  { %512 = vmax.xlane.f32.xlu0 %v507_v42  ;;  %v663_v45 = vpop.f32.mrb[11].mxu0 }
 0x372   :  { %v513_v46 = vpop.xlane.xlu0 %512 }
 0x373   :  { %v514_v47 = vsub.f32 %v507_v42, %v513_v46 }
 0x375   :  { %v515_v48 = vmul.f32 1.442695, %v514_v47 }
 0x377   :  { %670 = vpow2.f32 %v515_v48 }
 0x381   :  { %v671_v49 = vpop.eup %670 }
 0x382   :  { %517 = vadd.xlane.f32.xlu0 %v671_v49 }
 0x40f   :  { %v518_v50 = vpop.xlane.xlu0 %517 }
 0x410   :  { %672 = vlog2.f32 %v518_v50 }
 0x41a   :  { %v673_v51 = vpop.eup %672 }
 0x41b   :  { %v520_v52 = vmul.f32 0.6931472, %v673_v51 }
 0x41d   :  { %v521_v53 = vsub.f32 %v514_v47, %v520_v52 }
 0x41f   :  { %v522_v54 = vpack.c.bf16 %v521_v53, %v521_v53 }
 0x421   :  { %523 = vst [vmem:[#allocation5] sm:$0xf] %v522_v54 }
 0x422   :  { %707 = shalt.err (!%p704_p12)
}
 0x423   :  { %s708_s9 = scalar_lea.hbm %s920_s7, 64 }
 0x424   :  { %p709_p13 = scmp.ne.s32.totalorder %s920_s7, %s708_s9  ;;  %p712_p0 = scmp.lt.u32.totalorder %s708_s9, %s920_s7 }
 0x426   :  { %p714_p1 = pnand %p712_p0, %p709_p13 }
 0x428   :  { %717 = shalt.err (!%p714_p1)
}
 0x429   :  { %533 = dma.vmem_to_hbm [thread:$0]  %s531_s5, 64, %s920_s7, [#allocation4]  }
 0x42a   :  { %720 = dma.done.wait [#allocation4], 64  }
 0x42b   :  { %721 = vsyncadd [#allocation4], 4294967232 }
 0x42c   :  { %537 = vsyncpa [#allocation3], 1 }
 0x42d   :  { %538 = vsyncpa [#allocation4], 1 }

</bundles_post_ra>
